<compile_context>
chip_gen: v5e
topology: v5e:2x2
jax: 0.10.0
libtpu: 0.0.40
codegen_flags: <defaults>
</compile_context>

<pallas_src>
import functools

import jax
import jax.numpy as jnp
from jax.experimental import pallas as pl
from jax.experimental.pallas import tpu as pltpu


def _elr_kernel(logits_ref, stored_ref, labels_ref, new_rows_ref, part_ref,
                *, beta, lam, batch, padded_batch):
    tb, c = logits_ref.shape
    blk = pl.program_id(0)

    logits = logits_ref[...].astype(jnp.float32)   # (TB, C) — in-kernel upcast
    stored = stored_ref[...]                       # (TB, C) f32 gathered rows
    labels = labels_ref[...]                       # (TB, 1) i32

    # --- softmax over the class (lane) axis, then clamp ---------------------
    m = jnp.max(logits, axis=-1, keepdims=True)              # (TB, 1)
    e = jnp.exp(logits - m)
    denom = jnp.sum(e, axis=-1, keepdims=True)                # (TB, 1)
    pred = e * (1.0 / denom)                                  # hoisted recip
    pred = jnp.clip(pred, 0.0001, 1.0 - 0.0001)

    # --- cross entropy on raw logits: lse(logits) - logits[label] -----------
    lse = m + jnp.log(denom)                                  # (TB, 1)
    class_ids = jax.lax.broadcasted_iota(jnp.int32, (tb, c), 1)
    onehot = (class_ids == labels).astype(jnp.float32)        # (TB, C)
    picked = jnp.sum(onehot * logits, axis=-1, keepdims=True)
    ce = lse - picked                                         # (TB, 1)

    # --- EMA update of the gathered target rows (pred is "detached") --------
    pred_norm = pred * (1.0 / jnp.sum(pred, axis=-1, keepdims=True))
    new_rows = beta * stored + (1.0 - beta) * pred_norm
    new_rows_ref[...] = new_rows                              # (TB, C)

    # --- ELR regularization term per row -------------------------------------
    dot = jnp.sum(new_rows * pred, axis=-1, keepdims=True)    # (TB, 1)
    elr = jnp.log(1.0 - dot)

    contrib = ce + lam * elr                                  # (TB, 1)
    if padded_batch != batch:                                 # static check
        row_ids = blk * tb + jax.lax.broadcasted_iota(jnp.int32, (tb, 1), 0)
        contrib = jnp.where(row_ids < batch, contrib, 0.0)

    # One scalar per block; wrapper sums partials and divides by B.
    part_ref[...] = jnp.sum(contrib, axis=0, keepdims=True).reshape(1, 1, 1)


def elr_loss(stored_targets, indices, logits, labels, *, beta=0.3, lam=3.0):
    """Returns (scalar loss, updated stored_targets)."""
    B, C = logits.shape
    idx = indices.astype(jnp.int32)
    lbl = labels.astype(jnp.int32)

    # Gather only the B touched rows (no full-table dtype/HBM round trip).
    stored_rows = stored_targets[idx].astype(jnp.float32)     # (B, C)

    # Row tiling: TB rows per grid step; small B -> one block, one grid step.
    TB = min(256, ((B + 7) // 8) * 8)
    nblk = (B + TB - 1) // TB
    Bpad = nblk * TB

    def pad_rows(x):
        if Bpad == B:
            return x
        return jnp.pad(x, ((0, Bpad - B),) + ((0, 0),) * (x.ndim - 1))

    logits_p = pad_rows(logits)                     # keep caller dtype (bf16 ok)
    stored_p = pad_rows(stored_rows)
    labels_p = pad_rows(lbl.reshape(B, 1))

    kernel = functools.partial(_elr_kernel, beta=float(beta), lam=float(lam),
                               batch=B, padded_batch=Bpad)

    new_rows_p, partials = pl.pallas_call(
        kernel,
        out_shape=(
            jax.ShapeDtypeStruct((Bpad, C), jnp.float32),     # updated EMA rows
            jax.ShapeDtypeStruct((nblk, 1, 1), jnp.float32),  # per-block loss
        ),
        grid_spec=pltpu.PrefetchScalarGridSpec(
            num_scalar_prefetch=0,
            grid=(nblk,),
            in_specs=[
                pl.BlockSpec((TB, C), lambda i: (i, 0)),      # logits rows
                pl.BlockSpec((TB, C), lambda i: (i, 0)),      # gathered rows
                pl.BlockSpec((TB, 1), lambda i: (i, 0)),      # labels
            ],
            out_specs=(
                pl.BlockSpec((TB, C), lambda i: (i, 0)),      # new EMA rows
                pl.BlockSpec((1, 1, 1), lambda i: (i, 0, 0)), # loss partials
            ),
        ),
        compiler_params=pltpu.CompilerParams(
            dimension_semantics=("parallel",)),
    )(logits_p, stored_p, labels_p)

    loss = jnp.sum(partials) / B                    # mean(ce) + lam * mean(elr)
    new_stored = stored_targets.at[idx].set(
        new_rows_p[:B].astype(stored_targets.dtype))
    return loss, new_stored


def _elr_loss_ref(stored_targets, indices, logits, labels, *, beta=0.3, lam=3.0):
    """Pure-JAX reference mirroring the PyTorch forward."""
    logits = logits.astype(jnp.float32)
    pred = jax.nn.softmax(logits, axis=1)
    pred = jnp.clip(pred, 0.0001, 1.0 - 0.0001)
    ce = jnp.mean(
        jax.nn.logsumexp(logits, axis=1)
        - jnp.take_along_axis(logits, labels[:, None], axis=1)[:, 0]
    )
    pred_norm = pred / jnp.sum(pred, axis=1, keepdims=True)
    new_rows = beta * stored_targets[indices] + (1.0 - beta) * pred_norm
    new_stored = stored_targets.at[indices].set(new_rows)
    elr = jnp.mean(jnp.log(1.0 - jnp.sum(new_rows * pred, axis=1)))
    return ce + lam * elr, new_stored


if __name__ == "__main__":
    n_examples, n_classes, batch = 16, 10, 8
    beta, lam = 0.3, 3.0

    key = jax.random.PRNGKey(0)
    k_logits, k_labels, k_idx = jax.random.split(key, 3)

    logits = jax.random.normal(k_logits, (batch, n_classes), dtype=jnp.float32)
    labels = jax.random.randint(k_labels, (batch,), 0, n_classes, dtype=jnp.int32)
    indices = jax.random.permutation(k_idx, n_examples)[:batch].astype(jnp.int32)
    stored_targets = jnp.zeros((n_examples, n_classes), dtype=jnp.float32)

    loss, new_stored = elr_loss(stored_targets, indices, logits, labels,
                                beta=beta, lam=lam)
    jax.block_until_ready((loss, new_stored))

    loss_ref, new_stored_ref = _elr_loss_ref(stored_targets, indices, logits,
                                             labels, beta=beta, lam=lam)
    assert jnp.allclose(loss, loss_ref, atol=1e-5, rtol=1e-5), (loss, loss_ref)
    assert jnp.allclose(new_stored, new_stored_ref, atol=1e-5, rtol=1e-5)

    print("KERNEL_OK")
</pallas_src>

<mosaic_0001>
module attributes {stable_mosaic.version = 11 : i64} {
  func.func @_elr_kernel(%arg0: i32, %arg1: memref<8x10xf32, #tpu.memory_space<vmem>>, %arg2: memref<8x10xf32, #tpu.memory_space<vmem>>, %arg3: memref<8x1xi32, #tpu.memory_space<vmem>>, %arg4: memref<8x10xf32, #tpu.memory_space<vmem>>, %arg5: memref<1x1x1xf32, #tpu.memory_space<vmem>>) attributes {dimension_semantics = [#tpu.dimension_semantics<parallel>], iteration_bounds = array<i64: 1>, scalar_prefetch = 0 : i64, scratch_operands = 0 : i64, tpu.core_type = #tpu.core_type<tc>, window_params = [{transform_indices = @transform_0, window_bounds = array<i64: 8, 10>}, {transform_indices = @transform_1, window_bounds = array<i64: 8, 10>}, {transform_indices = @transform_2, window_bounds = array<i64: 8, 1>}, {transform_indices = @transform_3, window_bounds = array<i64: 8, 10>}, {transform_indices = @transform_4, window_bounds = array<i64: 1, 1, 1>}]} {
    %c0 = arith.constant 0 : index
    %c0_0 = arith.constant 0 : index
    %0 = vector.load %arg1[%c0, %c0_0] : memref<8x10xf32, #tpu.memory_space<vmem>>, vector<8x10xf32>
    %c0_1 = arith.constant 0 : index
    %c0_2 = arith.constant 0 : index
    %1 = vector.load %arg2[%c0_1, %c0_2] : memref<8x10xf32, #tpu.memory_space<vmem>>, vector<8x10xf32>
    %c0_3 = arith.constant 0 : index
    %c0_4 = arith.constant 0 : index
    %2 = vector.load %arg3[%c0_3, %c0_4] : memref<8x1xi32, #tpu.memory_space<vmem>>, vector<8x1xi32>
    %cst = arith.constant dense<0xFF800000> : vector<8xf32>
    %3 = vector.multi_reduction <maximumf>, %0, %cst [1] : vector<8x10xf32> to vector<8xf32>
    %4 = vector.shape_cast %3 : vector<8xf32> to vector<8x1xf32>
    %5 = vector.broadcast %4 : vector<8x1xf32> to vector<8x10xf32>
    %6 = arith.subf %0, %5 : vector<8x10xf32>
    %7 = math.exp %6 : vector<8x10xf32>
    %cst_5 = arith.constant dense<0.000000e+00> : vector<8xf32>
    %8 = vector.multi_reduction <add>, %7, %cst_5 [1] : vector<8x10xf32> to vector<8xf32>
    %9 = vector.shape_cast %8 : vector<8xf32> to vector<8x1xf32>
    %cst_6 = arith.constant 1.000000e+00 : f32
    %10 = vector.broadcast %cst_6 : f32 to vector<8x1xf32>
    %11 = arith.divf %10, %9 : vector<8x1xf32>
    %12 = vector.broadcast %11 : vector<8x1xf32> to vector<8x10xf32>
    %13 = arith.mulf %7, %12 : vector<8x10xf32>
    %cst_7 = arith.constant 9.99999974E-5 : f32
    %cst_8 = arith.constant 0.999899983 : f32
    %14 = vector.broadcast %cst_7 : f32 to vector<8x10xf32>
    %15 = arith.maximumf %14, %13 : vector<8x10xf32>
    %16 = vector.broadcast %cst_8 : f32 to vector<8x10xf32>
    %17 = arith.minimumf %16, %15 : vector<8x10xf32>
    %18 = math.log %9 : vector<8x1xf32>
    %19 = arith.addf %4, %18 : vector<8x1xf32>
    %20 = tpu.iota {dimensions = array<i32: 1>} : vector<8x10xi32>
    %21 = vector.broadcast %2 : vector<8x1xi32> to vector<8x10xi32>
    %22 = arith.cmpi eq, %20, %21 : vector<8x10xi32>
    %23 = arith.extui %22 : vector<8x10xi1> to vector<8x10xi32>
    %24 = arith.sitofp %23 : vector<8x10xi32> to vector<8x10xf32>
    %25 = arith.mulf %24, %0 : vector<8x10xf32>
    %cst_9 = arith.constant dense<0.000000e+00> : vector<8xf32>
    %26 = vector.multi_reduction <add>, %25, %cst_9 [1] : vector<8x10xf32> to vector<8xf32>
    %27 = vector.shape_cast %26 : vector<8xf32> to vector<8x1xf32>
    %28 = arith.subf %19, %27 : vector<8x1xf32>
    %cst_10 = arith.constant dense<0.000000e+00> : vector<8xf32>
    %29 = vector.multi_reduction <add>, %17, %cst_10 [1] : vector<8x10xf32> to vector<8xf32>
    %30 = vector.shape_cast %29 : vector<8xf32> to vector<8x1xf32>
    %cst_11 = arith.constant 1.000000e+00 : f32
    %31 = vector.broadcast %cst_11 : f32 to vector<8x1xf32>
    %32 = arith.divf %31, %30 : vector<8x1xf32>
    %33 = vector.broadcast %32 : vector<8x1xf32> to vector<8x10xf32>
    %34 = arith.mulf %17, %33 : vector<8x10xf32>
    %cst_12 = arith.constant 3.000000e-01 : f32
    %35 = vector.broadcast %cst_12 : f32 to vector<8x10xf32>
    %36 = arith.mulf %35, %1 : vector<8x10xf32>
    %cst_13 = arith.constant 0.699999988 : f32
    %37 = vector.broadcast %cst_13 : f32 to vector<8x10xf32>
    %38 = arith.mulf %37, %34 : vector<8x10xf32>
    %39 = arith.addf %36, %38 : vector<8x10xf32>
    %c0_14 = arith.constant 0 : index
    %c0_15 = arith.constant 0 : index
    %40 = vector.load %arg4[%c0_14, %c0_15] : memref<8x10xf32, #tpu.memory_space<vmem>>, vector<8x10xf32>
    tpu.vector_store %arg4[%c0_14, %c0_15], %39 {strides = array<i32>} : memref<8x10xf32, #tpu.memory_space<vmem>>, vector<8x10xf32>,
    %41 = arith.mulf %39, %17 : vector<8x10xf32>
    %cst_16 = arith.constant dense<0.000000e+00> : vector<8xf32>
    %42 = vector.multi_reduction <add>, %41, %cst_16 [1] : vector<8x10xf32> to vector<8xf32>
    %43 = vector.shape_cast %42 : vector<8xf32> to vector<8x1xf32>
    %cst_17 = arith.constant 1.000000e+00 : f32
    %44 = vector.broadcast %cst_17 : f32 to vector<8x1xf32>
    %45 = arith.subf %44, %43 : vector<8x1xf32>
    %46 = math.log %45 : vector<8x1xf32>
    %cst_18 = arith.constant 3.000000e+00 : f32
    %47 = vector.broadcast %cst_18 : f32 to vector<8x1xf32>
    %48 = arith.mulf %47, %46 : vector<8x1xf32>
    %49 = arith.addf %28, %48 : vector<8x1xf32>
    %cst_19 = arith.constant dense<0.000000e+00> : vector<1xf32>
    %50 = vector.multi_reduction <add>, %49, %cst_19 [0] : vector<8x1xf32> to vector<1xf32>
    %51 = vector.shape_cast %50 : vector<1xf32> to vector<1x1xf32>
    %52 = vector.shape_cast %51 : vector<1x1xf32> to vector<1x1x1xf32>
    %c0_20 = arith.constant 0 : index
    %c0_21 = arith.constant 0 : index
    %c0_22 = arith.constant 0 : index
    %53 = vector.load %arg5[%c0_20, %c0_21, %c0_22] : memref<1x1x1xf32, #tpu.memory_space<vmem>>, vector<1x1x1xf32>
    tpu.vector_store %arg5[%c0_20, %c0_21, %c0_22], %52 {strides = array<i32>} : memref<1x1x1xf32, #tpu.memory_space<vmem>>, vector<1x1x1xf32>,
    return
  }
  func.func @transform_0(%arg0: i32) -> (i32, i32) {
    %c0_i32 = arith.constant 0 : i32
    %c0_i32_0 = arith.constant 0 : i32
    return %arg0, %c0_i32 : i32, i32
  }
  func.func @transform_1(%arg0: i32) -> (i32, i32) {
    %c0_i32 = arith.constant 0 : i32
    %c0_i32_0 = arith.constant 0 : i32
    return %arg0, %c0_i32 : i32, i32
  }
  func.func @transform_2(%arg0: i32) -> (i32, i32) {
    %c0_i32 = arith.constant 0 : i32
    %c0_i32_0 = arith.constant 0 : i32
    return %arg0, %c0_i32 : i32, i32
  }
  func.func @transform_3(%arg0: i32) -> (i32, i32) {
    %c0_i32 = arith.constant 0 : i32
    %c0_i32_0 = arith.constant 0 : i32
    return %arg0, %c0_i32 : i32, i32
  }
  func.func @transform_4(%arg0: i32) -> (i32, i32, i32) {
    %c0_i32 = arith.constant 0 : i32
    %c0_i32_0 = arith.constant 0 : i32
    %c0_i32_1 = arith.constant 0 : i32
    return %arg0, %c0_i32, %c0_i32_0 : i32, i32, i32
  }
}

</mosaic_0001>

<bundles_post_ra>
// kernel: tpu_custom_call.1
= control target key start
LH: loop header
LB: loop body
LE: loop exit
PB: predicated region body
PF: predicated region fallthrough
CT: control target
= control target key end

     0   :  { %10 = vsyncpa [#allocation3], 0  ;;  %s308_s0 = inlined_call_operand.vmem [shape: f32[8,10], index: 0, kind: input, shape index: {}]   ;;  %s309_s1 = inlined_call_operand.hbm [shape: f32[8,10], index: 1, kind: input, shape index: {}]   ;;  %s310_s2 = inlined_call_operand.vmem [shape: s32[8,1], index: 2, kind: input, shape index: {}]   ;;  %s311_s3 = inlined_call_operand.hbm [shape: f32[8,10], index: 3, kind: output, shape index: {0}]   ;;  %s312_s4 = inlined_call_operand.hbm [shape: f32[1,1,1], index: 4, kind: output, shape index: {1}]  }
   0x1   :  { %11 = vsyncpa [#allocation4], 0 }
   0x2   :  { %12 = vsyncpa [#allocation7], 0  ;;  %s20_s17 = sshll.u32 %s309_s1, 4  ;;  %s248_s18 = smov [#allocation2]   ;;  %s21_s17 = int_to_ptr.hbm [resolvable:$true] %s20_s17 }
   0x3   :  { %s22_s19 = sshll.u32 %s248_s18, 4  ;;  %s23_s19 = int_to_ptr.vmem [resolvable:$true] %s22_s19 }
   0x4   :  { %25 = dma.hbm_to_vmem [thread:$0]  %s21_s17, 128, %s23_s19, [#allocation3]  }
   0x5   :  { %242 = dma.done.wait [#allocation3], 128  }
   0x6   :  { %243 = vsyncadd [#allocation3], 4294967168  ;;  %vm35_vm0 = vcmask 80896   ;;  %v284_v0 = vld [vmem:[%s308_s0] sm:$0xff]  ;;  %v249_v7 = vmov 0   ;;  %v66_v36 = vlaneseq  ;;  %v250_v45 = vmov 0.0  }
   0x7   :  { %v36_v1 = vsel %vm35_vm0, %v284_v0, -inf  ;;  %158 = vset.pattern.permute.xlu1 %v249_v7  ;;  %159 = vset.pattern.permute.xlu0 %v249_v7  ;;  %v34_v23 = vld [vmem:[%s310_s2] sm:$0xff]  ;;  %s126_s23 = sshll.u32 %s311_s3, 4  ;;  %s251_s24 = smov [#allocation5]   ;;  %vm117_vm10 = vcmask 0   ;;  %s127_s23 = int_to_ptr.hbm [resolvable:$true] %s126_s23 }
   0x8   :  { %37 = vmax.xlane.f32.xlu0 %v36_v1  ;;  %v33_v33 = vld [vmem:[#allocation2] sm:$0xff]  ;;  %v67_v40 = vand.u32 127, %v66_v36  ;;  %s124_s25 = sshll.u32 %s251_s24, 4  ;;  %s252_s3 = smov [#allocation6]   ;;  %s125_s25 = int_to_ptr.vmem [resolvable:$true] %s124_s25 }
   0x9   :  { %v98_v38 = vmul.f32 0.3, %v33_v33  ;;  %s135_s26 = sshll.u32 %s252_s3, 4  ;;  %s137_s29 = sshll.u32 %s312_s4, 4  ;;  %s136_s26 = int_to_ptr.vmem [resolvable:$true] %s135_s26  ;;  %s138_s29 = int_to_ptr.hbm [resolvable:$true] %s137_s29 }
  0x7b   :  { %v288_v2 = vpop.xlane.xlu0 %37 }
  0x7c   :  { %v39_v3 = vsub.f32 %v284_v0, %v288_v2 }
  0x7e   :  { %v40_v4 = vmul.f32 1.442695, %v39_v3 }
  0x80   :  { %160 = vpow2.f32 %v40_v4 }
  0x86   :  { %v161_v5 = vpop.eup %160 }
  0x87   :  { %v42_v6 = vsel %vm35_vm0, %v161_v5, 0.0 }
  0x88   :  { %43 = vadd.xlane.f32.xlu0 %v42_v6 }
  0xfb   :  { %v44_v8 = vpop.xlane.xlu0 %43 }
  0xfc   :  { %162 = vrcp.f32 %v44_v8  ;;  %v56_v12 = vand.u32 2147483648, %v44_v8  ;;  %v54_v14 = vand.u32 2147483647, %v44_v8  ;;  %vm50_vm2 = vweird.f32 %v44_v8 }
  0xfe   :  { %v57_v16 = vor.u32 1.1754944e-38, %v56_v12  ;;  %vm55_vm4 = vcmp.eq.f32.partialorder %v54_v14, 8.507059e+37 }
 0x102   :  { %v163_v9 = vpop.eup %162 }
 0x103   :  { %v46_v10 = vmul.f32 %v163_v9, %v44_v8  ;;  %vm51_vm1 = vweird.f32 %v163_v9 }
 0x104   :  { %vm52_vm3 = vmor %vm50_vm2, %vm51_vm1 }
 0x105   :  { %v47_v11 = vsub.f32 1.0, %v46_v10 }
 0x107   :  { %v48_v13 = vmul.f32 %v163_v9, %v47_v11 }
 0x109   :  { %v49_v15 = vadd.f32 %v163_v9, %v48_v13 }
 0x10b   :  { %v53_v17 = vsel %vm52_vm3, %v163_v9, %v49_v15 }
 0x10c   :  { %v58_v18 = vsel %vm55_vm4, %v57_v16, %v53_v17 }
 0x10d   :  { %v60_v19 = vmul.f32 %v161_v5, %v58_v18 }
 0x10f   :  { %v61_v20 = vmax.f32 %v60_v19, 0.0001 }
 0x111   :  { %v62_v21 = vmin.f32 %v61_v20, 0.9999 }
 0x113   :  { %v79_v22 = vsel %vm35_vm0, %v62_v21, 0.0 }
 0x114   :  { %80 = vadd.xlane.f32.xlu1 %v79_v22 }
 0x12d   :  { %69 = vperm.xlu1 %158, %v34_v23  }
 0x187   :  { %v81_v24 = vpop.xlane.xlu1 %80 }
 0x188   :  { %164 = vrcp.f32 %v81_v24  ;;  %v93_v28 = vand.u32 2147483648, %v81_v24  ;;  %v91_v30 = vand.u32 2147483647, %v81_v24  ;;  %vm87_vm6 = vweird.f32 %v81_v24 }
 0x189   :  { %166 = vlog2.f32 %v44_v8 }
 0x18a   :  { %v94_v32 = vor.u32 1.1754944e-38, %v93_v28  ;;  %vm92_vm8 = vcmp.eq.f32.partialorder %v91_v30, 8.507059e+37 }
 0x18e   :  { %v165_v25 = vpop.eup %164 }
 0x18f   :  { %v83_v26 = vmul.f32 %v165_v25, %v81_v24  ;;  %vm88_vm5 = vweird.f32 %v165_v25  ;;  %v167_v51 = vpop.eup %166 }
 0x190   :  { %vm89_vm7 = vmor %vm87_vm6, %vm88_vm5  ;;  %v64_v52 = vmul.f32 0.6931472, %v167_v51 }
 0x191   :  { %v84_v27 = vsub.f32 1.0, %v83_v26 }
 0x192   :  { %v65_v56 = vadd.f32 %v64_v52, %v288_v2 }
 0x193   :  { %v85_v29 = vmul.f32 %v165_v25, %v84_v27 }
 0x195   :  { %v86_v31 = vadd.f32 %v165_v25, %v85_v29 }
 0x197   :  { %v90_v34 = vsel %vm89_vm7, %v165_v25, %v86_v31 }
 0x198   :  { %v95_v35 = vsel %vm92_vm8, %v94_v32, %v90_v34 }
 0x199   :  { %v97_v37 = vmul.f32 %v95_v35, %v62_v21 }
 0x19b   :  { %v99_v39 = vmul.f32 0.7, %v97_v37 }
 0x19d   :  { %v100_v41 = vadd.f32 %v99_v39, %v98_v38 }
 0x19f   :  { %v102_v42 = vmul.f32 %v100_v41, %v62_v21  ;;  %101 = vst.msk [vmem:[#allocation5] sm:$0xff] %vm35_vm0, %v100_v41  ;;  %v70_v43 = vpop.permute.xlu1 %69 }
 0x1a0   :  { %vm71_vm9 = vcmp.eq.s32.totalorder %v67_v40, %v70_v43  ;;  %129 = dma.vmem_to_hbm [thread:$0]  %s125_s25, 128, %s127_s23, [#allocation4]  }
 0x1a1   :  { %v103_v44 = vsel %vm35_vm0, %v102_v42, 0.0  ;;  %v152_v46 = vsel %vm71_vm9, 1.0, %v250_v45 }
 0x1a2   :  { %104 = vadd.xlane.f32.xlu2 %v103_v44  ;;  %v74_v47 = vmul.f32 %v152_v46, %v284_v0 }
 0x1a4   :  { %v75_v48 = vsel %vm35_vm0, %v74_v47, 0.0 }
 0x1aa   :  { %76 = vadd.xlane.f32.xlu2 %v75_v48 }
 0x215   :  { %v105_v49 = vpop.xlane.xlu2 %104 }
 0x216   :  { %v106_v50 = vsub.f32 1.0, %v105_v49 }
 0x218   :  { %168 = vlog2.f32 %v106_v50 }
 0x21d   :  { %v77_v54 = vpop.xlane.xlu2 %76 }
 0x21e   :  { %v169_v53 = vpop.eup %168  ;;  %v78_v58 = vsub.f32 %v65_v56, %v77_v54 }
 0x21f   :  { %v108_v55 = vmul.f32 0.6931472, %v169_v53 }
 0x221   :  { %v109_v57 = vmul.f32 3.0, %v108_v55 }
 0x223   :  { %v110_v59 = vadd.f32 %v109_v57, %v78_v58 }
 0x225   :  { %v111_v60 = vrot.slane %v110_v59, 4 }
 0x227   :  { %v112_v61 = vadd.f32 %v111_v60, %v110_v59 }
 0x229   :  { %v113_v62 = vrot.slane %v112_v61, 2 }
 0x22b   :  { %v114_v63 = vadd.f32 %v113_v62, %v112_v61 }
 0x22d   :  { %v115_v0 = vrot.slane %v114_v63, 1 }
 0x22f   :  { %v116_v1 = vadd.f32 %v115_v0, %v114_v63 }
 0x231   :  { %118 = vst.msk [vmem:[#allocation6] sm:$0x1] %vm117_vm10, %v116_v1 }
 0x232   :  { %140 = dma.vmem_to_hbm [thread:$0]  %s136_s26, 16, %s138_s29, [#allocation7]  }
 0x233   :  { %244 = dma.done.wait [#allocation4], 128  }
 0x234   :  { %245 = vsyncadd [#allocation4], 4294967168 }
 0x235   :  { %246 = dma.done.wait [#allocation7], 16  }
 0x236   :  { %247 = vsyncadd [#allocation7], 4294967280 }
 0x237   :  { %149 = vsyncpa [#allocation3], 1 }
 0x238   :  { %150 = vsyncpa [#allocation4], 1 }
 0x239   :  { %151 = vsyncpa [#allocation7], 1 }

</bundles_post_ra>
